<compile_context>
chip_gen: v7x
topology: tpu7x:2x2x1
jax: 0.10.0
libtpu: 0.0.40
codegen_flags: <defaults>
</compile_context>

<pallas_src>
import functools

import jax
import jax.numpy as jnp
import numpy as np
from jax.experimental import pallas as pl
from jax.experimental.pallas import tpu as pltpu


def _log_softmax_lastdim(x):
    x = x - jnp.max(x, axis=-1, keepdims=True)
    return x - jnp.log(jnp.sum(jnp.exp(x), axis=-1, keepdims=True))


def _dino_loss_kernel(student_ref, teacher_ref, center_ref,
                      loss_ref, csum_ref, csum_scratch,
                      *, n_s, n_t, student_temp, teacher_temp):
    inner = pl.program_id(1)
    inner_last = pl.num_programs(1) - 1

    # Constant-folded reciprocals (no per-tensor divides).
    inv_st = 1.0 / float(student_temp)
    inv_tt = 1.0 / float(teacher_temp)

    @pl.when(inner == 0)
    def _init():
        loss_ref[...] = jnp.zeros_like(loss_ref)
        csum_scratch[...] = jnp.zeros_like(csum_scratch)

    center = center_ref[...].astype(jnp.float32)                  # (1, D)

    s_total = None   # (TB, D): sum over student views of log_softmax(s / T_s)
    t_sum = None     # (TB, D): sum over teacher views of softmax((t - c) / T_t)
    diag = None      # (TB, 1): sum_{t < n_s} <softmax_t, log_softmax_t>

    # Interleave teacher/student view processing so only the running sums and
    # the current view's tensors are live at any time.
    for i in range(n_t):
        t_raw = teacher_ref[i].astype(jnp.float32)                # (TB, D)
        # Center-EMA numerator: raw teacher logit sum (VPU add into scratch).
        csum_scratch[...] += t_raw

        y = (t_raw - center) * inv_tt
        y = y - jnp.max(y, axis=-1, keepdims=True)
        e = jnp.exp(y)
        t_sm = e * pl.reciprocal(jnp.sum(e, axis=-1, keepdims=True), approx=True)
        t_sum = t_sm if t_sum is None else t_sum + t_sm

        if i < n_s:
            ls = _log_softmax_lastdim(student_ref[i].astype(jnp.float32) * inv_st)
            s_total = ls if s_total is None else s_total + ls
            d = jnp.sum(t_sm * ls, axis=-1, keepdims=True)        # (TB, 1)
            diag = d if diag is None else diag + d

    for s_ix in range(n_t, n_s):
        ls = _log_softmax_lastdim(student_ref[s_ix].astype(jnp.float32) * inv_st)
        s_total = ls if s_total is None else s_total + ls

    # sum_{t, s != t} -<T_t, logS_s> = diag - <Tsum, S_total>   (per sample)
    cross = jnp.sum(t_sum * s_total, axis=-1, keepdims=True)      # (TB, 1)
    ce = diag - cross if diag is not None else -cross             # (TB, 1)
    loss_ref[...] += jnp.sum(ce, axis=0, keepdims=True)[None]     # (1, 1, 1)

    @pl.when(inner == inner_last)
    def _finalize():
        csum_ref[...] = jnp.sum(csum_scratch[...], axis=0, keepdims=True)[None]


def _pick_block_batch(batch, n_views_total, dim, itemsize, vmem_budget_bytes):
    """Largest multiple-of-8 divisor of `batch` whose working set fits the budget."""
    # Per batch-row: double-buffered input tiles + ~7 live f32 (row, D) arrays
    # (running sums, current-view temps, center-sum scratch).
    per_row = n_views_total * dim * itemsize * 2 + 7 * dim * 4
    cap = max(8, vmem_budget_bytes // max(per_row, 1))
    cap = int(min(cap, 1024, batch))
    best = None
    for tb in range(8, cap + 1, 8):
        if batch % tb == 0:
            best = tb
    if best is None:
        best = batch  # full-batch block (always layout-legal)
    return best


def dino_loss(student, teacher, center, *, student_temp=0.1, teacher_temp=0.04,
              center_momentum=0.9, block_batch=None,
              vmem_budget_bytes=24 * 1024 * 1024):
    """Returns (scalar loss, updated center [1, D])."""
    n_s, batch, dim = student.shape
    n_t, batch_t, dim_t = teacher.shape
    assert batch_t == batch and dim_t == dim
    assert center.shape == (1, dim)
    assert n_s >= 1 and n_t >= 1

    n_loss_terms = sum((n_s - 1) if t_ix < n_s else n_s for t_ix in range(n_t))
    assert n_loss_terms > 0, "need at least one cross-view pair"

    itemsize = max(student.dtype.itemsize, teacher.dtype.itemsize)
    if block_batch is None:
        block_batch = _pick_block_batch(batch, n_s + n_t, dim, itemsize,
                                        vmem_budget_bytes)
    assert batch % block_batch == 0, (batch, block_batch)

    num_tiles = batch // block_batch
    # Outer "parallel" axis (megacore shard on v7x) over per-core partials,
    # inner "arbitrary" axis accumulates batch tiles.
    n_outer = 2 if (num_tiles >= 2 and num_tiles % 2 == 0) else 1
    n_inner = num_tiles // n_outer
    grid = (n_outer, n_inner)

    # Scoped VMEM: double-buffered input tiles + f32 intermediates/scratch.
    # Keep the ceiling <= 60 MiB so the budget is valid on v7x's 64 MiB VMEM.
    step_bytes = (n_s + n_t) * block_batch * dim * itemsize
    vmem_limit = (2 * step_bytes
                  + 8 * block_batch * dim * 4
                  + 4 * dim * 4 + 4096
                  + (4 << 20))
    vmem_limit = int(min(max(vmem_limit, 16 << 20), 60 << 20))

    kernel = functools.partial(
        _dino_loss_kernel,
        n_s=n_s, n_t=n_t, student_temp=student_temp, teacher_temp=teacher_temp)

    center_f32 = center.astype(jnp.float32)

    loss_parts, csum_parts = pl.pallas_call(
        kernel,
        out_shape=(jax.ShapeDtypeStruct((n_outer, 1, 1), jnp.float32),
                   jax.ShapeDtypeStruct((n_outer, 1, dim), jnp.float32)),
        grid=grid,
        in_specs=[
            pl.BlockSpec((n_s, block_batch, dim),
                         lambda o, i: (0, o * n_inner + i, 0)),
            pl.BlockSpec((n_t, block_batch, dim),
                         lambda o, i: (0, o * n_inner + i, 0)),
            pl.BlockSpec((1, dim), lambda o, i: (0, 0)),
        ],
        out_specs=(
            pl.BlockSpec((1, 1, 1), lambda o, i: (o, 0, 0)),
            pl.BlockSpec((1, 1, dim), lambda o, i: (o, 0, 0)),
        ),
        scratch_shapes=[pltpu.VMEM((block_batch, dim), jnp.float32)],
        compiler_params=pltpu.CompilerParams(
            dimension_semantics=("parallel", "arbitrary"),
            vmem_limit_bytes=vmem_limit),
    )(student, teacher, center_f32)

    # Tiny XLA epilogue: cross-core partial reduce + normalization + EMA blend.
    loss = jnp.sum(loss_parts) * (1.0 / (float(batch) * float(n_loss_terms)))
    batch_center = jnp.sum(csum_parts, axis=0) * (1.0 / (float(n_t) * float(batch)))
    new_center = center_f32 * center_momentum + (1.0 - center_momentum) * batch_center
    return loss, new_center


def dino_loss_reference(student, teacher, center, *, student_temp=0.1,
                        teacher_temp=0.04, center_momentum=0.9):
    s_ls = jax.nn.log_softmax(student / student_temp, axis=-1)
    t_sm = jax.nn.softmax((teacher - center[None, :, :]) / teacher_temp, axis=-1)
    total, n = 0.0, 0
    for t_ix in range(teacher.shape[0]):
        for s_ix in range(student.shape[0]):
            if t_ix == s_ix:
                continue
            total = total + jnp.mean(jnp.sum(-t_sm[t_ix] * s_ls[s_ix], axis=-1))
            n += 1
    loss = total / n
    batch_center = jnp.mean(teacher.reshape(-1, teacher.shape[-1]), axis=0,
                            keepdims=True)
    new_center = center * center_momentum + (1.0 - center_momentum) * batch_center
    return loss, new_center


if __name__ == "__main__":
    # DINO-consistent small shapes: 2 teacher (global) views, 4 student views.
    OUT_DIM = 256
    BATCH = 32
    N_STUDENT, N_TEACHER = 4, 2

    key = jax.random.PRNGKey(0)
    k_s, k_t = jax.random.split(key)
    student_logits = jax.random.normal(k_s, (N_STUDENT, BATCH, OUT_DIM), jnp.float32)
    teacher_logits = jax.random.normal(k_t, (N_TEACHER, BATCH, OUT_DIM), jnp.float32)
    # register_buffer('center', zeros(1, out_dim)) -> deterministic init
    center = jnp.zeros((1, OUT_DIM), jnp.float32)

    ref_loss, ref_center = dino_loss_reference(student_logits, teacher_logits, center)

    # tb=8  -> grid (2, 2): megacore split + cross-step accumulation
    # tb=16 -> grid (2, 1): init and finalize in the same step
    # None  -> auto tile (full batch), grid (1, 1)
    for tb in (8, 16, None):
        loss, new_center = dino_loss(student_logits, teacher_logits, center,
                                     block_batch=tb)
        jax.block_until_ready((loss, new_center))
        assert np.allclose(np.asarray(loss), np.asarray(ref_loss),
                           rtol=5e-3, atol=1e-5), (tb, loss, ref_loss)
        assert np.allclose(np.asarray(new_center), np.asarray(ref_center),
                           rtol=1e-5, atol=1e-6), tb

    # bf16 inputs (kernel upcasts to f32 internally) -> halves HBM read traffic.
    s_bf16 = student_logits.astype(jnp.bfloat16)
    t_bf16 = teacher_logits.astype(jnp.bfloat16)
    ref_loss_bf, ref_center_bf = dino_loss_reference(
        s_bf16.astype(jnp.float32), t_bf16.astype(jnp.float32), center)
    loss_bf, center_bf = dino_loss(s_bf16, t_bf16, center)
    jax.block_until_ready((loss_bf, center_bf))
    assert np.allclose(np.asarray(loss_bf), np.asarray(ref_loss_bf),
                       rtol=5e-3, atol=1e-4)
    assert np.allclose(np.asarray(center_bf), np.asarray(ref_center_bf),
                       rtol=1e-4, atol=1e-5)

    print("KERNEL_OK")
</pallas_src>

<mosaic_0001>
module attributes {stable_mosaic.version = 11 : i64} {
  func.func @_dino_loss_kernel(%arg0: i32, %arg1: i32, %arg2: memref<4x8x256xf32, #tpu.memory_space<vmem>>, %arg3: memref<2x8x256xf32, #tpu.memory_space<vmem>>, %arg4: memref<1x256xf32, #tpu.memory_space<vmem>>, %arg5: memref<1x1x1xf32, #tpu.memory_space<vmem>>, %arg6: memref<1x1x256xf32, #tpu.memory_space<vmem>>, %arg7: memref<8x256xf32, #tpu.memory_space<vmem>>) attributes {dimension_semantics = [#tpu.dimension_semantics<parallel>, #tpu.dimension_semantics<arbitrary>], iteration_bounds = array<i64: 2, 2>, scalar_prefetch = 0 : i64, scratch_operands = 1 : i64, tpu.core_type = #tpu.core_type<tc>, window_params = [{transform_indices = @transform_0, window_bounds = array<i64: 4, 8, 256>}, {transform_indices = @transform_1, window_bounds = array<i64: 2, 8, 256>}, {pipeline_mode = #tpu.pipeline_mode<synchronous>, transform_indices = @transform_2, window_bounds = array<i64: 1, 256>}, {transform_indices = @transform_3, window_bounds = array<i64: 1, 1, 1>}, {transform_indices = @transform_4, window_bounds = array<i64: 1, 1, 256>}]} {
    %c0_i32 = arith.constant 0 : i32
    %0 = arith.cmpi eq, %arg1, %c0_i32 : i32
    %1 = arith.extui %0 : i1 to i32
    %c0_i32_0 = arith.constant 0 : i32
    %2 = arith.cmpi ne, %1, %c0_i32_0 : i32
    scf.if %2 {
      %cst_53 = arith.constant 0.000000e+00 : f32
      %122 = vector.broadcast %cst_53 : f32 to vector<1x1x1xf32>
      %c0_54 = arith.constant 0 : index
      %c0_55 = arith.constant 0 : index
      %c0_56 = arith.constant 0 : index
      %123 = vector.load %arg5[%c0_54, %c0_55, %c0_56] : memref<1x1x1xf32, #tpu.memory_space<vmem>>, vector<1x1x1xf32>
      tpu.vector_store %arg5[%c0_54, %c0_55, %c0_56], %122 {strides = array<i32>} : memref<1x1x1xf32, #tpu.memory_space<vmem>>, vector<1x1x1xf32>,
      %cst_57 = arith.constant 0.000000e+00 : f32
      %124 = vector.broadcast %cst_57 : f32 to vector<8x256xf32>
      %c0_58 = arith.constant 0 : index
      %c0_59 = arith.constant 0 : index
      %125 = vector.load %arg7[%c0_58, %c0_59] : memref<8x256xf32, #tpu.memory_space<vmem>>, vector<8x256xf32>
      tpu.vector_store %arg7[%c0_58, %c0_59], %124 {strides = array<i32>} : memref<8x256xf32, #tpu.memory_space<vmem>>, vector<8x256xf32>,
    } else {
    }
    %c0 = arith.constant 0 : index
    %c0_1 = arith.constant 0 : index
    %3 = vector.load %arg4[%c0, %c0_1] : memref<1x256xf32, #tpu.memory_space<vmem>>, vector<1x256xf32>
    %c0_2 = arith.constant 0 : index
    %c0_3 = arith.constant 0 : index
    %c0_4 = arith.constant 0 : index
    %4 = vector.load %arg3[%c0_2, %c0_3, %c0_4] : memref<2x8x256xf32, #tpu.memory_space<vmem>>, vector<1x8x256xf32>
    %5 = vector.shape_cast %4 : vector<1x8x256xf32> to vector<8x256xf32>
    %c0_5 = arith.constant 0 : index
    %c0_6 = arith.constant 0 : index
    %6 = vector.load %arg7[%c0_5, %c0_6] : memref<8x256xf32, #tpu.memory_space<vmem>>, vector<8x256xf32>
    %7 = arith.addf %6, %5 : vector<8x256xf32>
    %c0_7 = arith.constant 0 : index
    %c0_8 = arith.constant 0 : index
    %8 = vector.load %arg7[%c0_7, %c0_8] : memref<8x256xf32, #tpu.memory_space<vmem>>, vector<8x256xf32>
    tpu.vector_store %arg7[%c0_7, %c0_8], %7 {strides = array<i32>} : memref<8x256xf32, #tpu.memory_space<vmem>>, vector<8x256xf32>,
    %9 = vector.broadcast %3 : vector<1x256xf32> to vector<8x256xf32>
    %10 = arith.subf %5, %9 : vector<8x256xf32>
    %cst = arith.constant 2.500000e+01 : f32
    %11 = vector.broadcast %cst : f32 to vector<8x256xf32>
    %12 = arith.mulf %10, %11 : vector<8x256xf32>
    %cst_9 = arith.constant dense<0xFF800000> : vector<8xf32>
    %13 = vector.multi_reduction <maximumf>, %12, %cst_9 [1] : vector<8x256xf32> to vector<8xf32>
    %14 = vector.shape_cast %13 : vector<8xf32> to vector<8x1xf32>
    %15 = vector.broadcast %14 : vector<8x1xf32> to vector<8x256xf32>
    %16 = arith.subf %12, %15 : vector<8x256xf32>
    %17 = math.exp %16 : vector<8x256xf32>
    %cst_10 = arith.constant dense<0.000000e+00> : vector<8xf32>
    %18 = vector.multi_reduction <add>, %17, %cst_10 [1] : vector<8x256xf32> to vector<8xf32>
    %19 = vector.shape_cast %18 : vector<8xf32> to vector<8x1xf32>
    %20 = tpu.reciprocal %19 {approx = true} : vector<8x1xf32> -> vector<8x1xf32>
    %21 = vector.broadcast %20 : vector<8x1xf32> to vector<8x256xf32>
    %22 = arith.mulf %17, %21 : vector<8x256xf32>
    %c0_11 = arith.constant 0 : index
    %c0_12 = arith.constant 0 : index
    %c0_13 = arith.constant 0 : index
    %23 = vector.load %arg2[%c0_11, %c0_12, %c0_13] : memref<4x8x256xf32, #tpu.memory_space<vmem>>, vector<1x8x256xf32>
    %24 = vector.shape_cast %23 : vector<1x8x256xf32> to vector<8x256xf32>
    %cst_14 = arith.constant 1.000000e+01 : f32
    %25 = vector.broadcast %cst_14 : f32 to vector<8x256xf32>
    %26 = arith.mulf %24, %25 : vector<8x256xf32>
    %cst_15 = arith.constant dense<0xFF800000> : vector<8xf32>
    %27 = vector.multi_reduction <maximumf>, %26, %cst_15 [1] : vector<8x256xf32> to vector<8xf32>
    %28 = vector.shape_cast %27 : vector<8xf32> to vector<8x1xf32>
    %29 = vector.broadcast %28 : vector<8x1xf32> to vector<8x256xf32>
    %30 = arith.subf %26, %29 : vector<8x256xf32>
    %31 = math.exp %30 : vector<8x256xf32>
    %cst_16 = arith.constant dense<0.000000e+00> : vector<8xf32>
    %32 = vector.multi_reduction <add>, %31, %cst_16 [1] : vector<8x256xf32> to vector<8xf32>
    %33 = vector.shape_cast %32 : vector<8xf32> to vector<8x1xf32>
    %34 = math.log %33 : vector<8x1xf32>
    %35 = vector.broadcast %34 : vector<8x1xf32> to vector<8x256xf32>
    %36 = arith.subf %30, %35 : vector<8x256xf32>
    %37 = arith.mulf %22, %36 : vector<8x256xf32>
    %cst_17 = arith.constant dense<0.000000e+00> : vector<8xf32>
    %38 = vector.multi_reduction <add>, %37, %cst_17 [1] : vector<8x256xf32> to vector<8xf32>
    %39 = vector.shape_cast %38 : vector<8xf32> to vector<8x1xf32>
    %c1 = arith.constant 1 : index
    %c0_18 = arith.constant 0 : index
    %c0_19 = arith.constant 0 : index
    %40 = vector.load %arg3[%c1, %c0_18, %c0_19] : memref<2x8x256xf32, #tpu.memory_space<vmem>>, vector<1x8x256xf32>
    %41 = vector.shape_cast %40 : vector<1x8x256xf32> to vector<8x256xf32>
    %c0_20 = arith.constant 0 : index
    %c0_21 = arith.constant 0 : index
    %42 = vector.load %arg7[%c0_20, %c0_21] : memref<8x256xf32, #tpu.memory_space<vmem>>, vector<8x256xf32>
    %43 = arith.addf %42, %41 : vector<8x256xf32>
    %c0_22 = arith.constant 0 : index
    %c0_23 = arith.constant 0 : index
    %44 = vector.load %arg7[%c0_22, %c0_23] : memref<8x256xf32, #tpu.memory_space<vmem>>, vector<8x256xf32>
    tpu.vector_store %arg7[%c0_22, %c0_23], %43 {strides = array<i32>} : memref<8x256xf32, #tpu.memory_space<vmem>>, vector<8x256xf32>,
    %45 = vector.broadcast %3 : vector<1x256xf32> to vector<8x256xf32>
    %46 = arith.subf %41, %45 : vector<8x256xf32>
    %cst_24 = arith.constant 2.500000e+01 : f32
    %47 = vector.broadcast %cst_24 : f32 to vector<8x256xf32>
    %48 = arith.mulf %46, %47 : vector<8x256xf32>
    %cst_25 = arith.constant dense<0xFF800000> : vector<8xf32>
    %49 = vector.multi_reduction <maximumf>, %48, %cst_25 [1] : vector<8x256xf32> to vector<8xf32>
    %50 = vector.shape_cast %49 : vector<8xf32> to vector<8x1xf32>
    %51 = vector.broadcast %50 : vector<8x1xf32> to vector<8x256xf32>
    %52 = arith.subf %48, %51 : vector<8x256xf32>
    %53 = math.exp %52 : vector<8x256xf32>
    %cst_26 = arith.constant dense<0.000000e+00> : vector<8xf32>
    %54 = vector.multi_reduction <add>, %53, %cst_26 [1] : vector<8x256xf32> to vector<8xf32>
    %55 = vector.shape_cast %54 : vector<8xf32> to vector<8x1xf32>
    %56 = tpu.reciprocal %55 {approx = true} : vector<8x1xf32> -> vector<8x1xf32>
    %57 = vector.broadcast %56 : vector<8x1xf32> to vector<8x256xf32>
    %58 = arith.mulf %53, %57 : vector<8x256xf32>
    %59 = arith.addf %22, %58 : vector<8x256xf32>
    %c1_27 = arith.constant 1 : index
    %c0_28 = arith.constant 0 : index
    %c0_29 = arith.constant 0 : index
    %60 = vector.load %arg2[%c1_27, %c0_28, %c0_29] : memref<4x8x256xf32, #tpu.memory_space<vmem>>, vector<1x8x256xf32>
    %61 = vector.shape_cast %60 : vector<1x8x256xf32> to vector<8x256xf32>
    %cst_30 = arith.constant 1.000000e+01 : f32
    %62 = vector.broadcast %cst_30 : f32 to vector<8x256xf32>
    %63 = arith.mulf %61, %62 : vector<8x256xf32>
    %cst_31 = arith.constant dense<0xFF800000> : vector<8xf32>
    %64 = vector.multi_reduction <maximumf>, %63, %cst_31 [1] : vector<8x256xf32> to vector<8xf32>
    %65 = vector.shape_cast %64 : vector<8xf32> to vector<8x1xf32>
    %66 = vector.broadcast %65 : vector<8x1xf32> to vector<8x256xf32>
    %67 = arith.subf %63, %66 : vector<8x256xf32>
    %68 = math.exp %67 : vector<8x256xf32>
    %cst_32 = arith.constant dense<0.000000e+00> : vector<8xf32>
    %69 = vector.multi_reduction <add>, %68, %cst_32 [1] : vector<8x256xf32> to vector<8xf32>
    %70 = vector.shape_cast %69 : vector<8xf32> to vector<8x1xf32>
    %71 = math.log %70 : vector<8x1xf32>
    %72 = vector.broadcast %71 : vector<8x1xf32> to vector<8x256xf32>
    %73 = arith.subf %67, %72 : vector<8x256xf32>
    %74 = arith.addf %36, %73 : vector<8x256xf32>
    %75 = arith.mulf %58, %73 : vector<8x256xf32>
    %cst_33 = arith.constant dense<0.000000e+00> : vector<8xf32>
    %76 = vector.multi_reduction <add>, %75, %cst_33 [1] : vector<8x256xf32> to vector<8xf32>
    %77 = vector.shape_cast %76 : vector<8xf32> to vector<8x1xf32>
    %78 = arith.addf %39, %77 : vector<8x1xf32>
    %c2 = arith.constant 2 : index
    %c0_34 = arith.constant 0 : index
    %c0_35 = arith.constant 0 : index
    %79 = vector.load %arg2[%c2, %c0_34, %c0_35] : memref<4x8x256xf32, #tpu.memory_space<vmem>>, vector<1x8x256xf32>
    %80 = vector.shape_cast %79 : vector<1x8x256xf32> to vector<8x256xf32>
    %cst_36 = arith.constant 1.000000e+01 : f32
    %81 = vector.broadcast %cst_36 : f32 to vector<8x256xf32>
    %82 = arith.mulf %80, %81 : vector<8x256xf32>
    %cst_37 = arith.constant dense<0xFF800000> : vector<8xf32>
    %83 = vector.multi_reduction <maximumf>, %82, %cst_37 [1] : vector<8x256xf32> to vector<8xf32>
    %84 = vector.shape_cast %83 : vector<8xf32> to vector<8x1xf32>
    %85 = vector.broadcast %84 : vector<8x1xf32> to vector<8x256xf32>
    %86 = arith.subf %82, %85 : vector<8x256xf32>
    %87 = math.exp %86 : vector<8x256xf32>
    %cst_38 = arith.constant dense<0.000000e+00> : vector<8xf32>
    %88 = vector.multi_reduction <add>, %87, %cst_38 [1] : vector<8x256xf32> to vector<8xf32>
    %89 = vector.shape_cast %88 : vector<8xf32> to vector<8x1xf32>
    %90 = math.log %89 : vector<8x1xf32>
    %91 = vector.broadcast %90 : vector<8x1xf32> to vector<8x256xf32>
    %92 = arith.subf %86, %91 : vector<8x256xf32>
    %93 = arith.addf %74, %92 : vector<8x256xf32>
    %c3 = arith.constant 3 : index
    %c0_39 = arith.constant 0 : index
    %c0_40 = arith.constant 0 : index
    %94 = vector.load %arg2[%c3, %c0_39, %c0_40] : memref<4x8x256xf32, #tpu.memory_space<vmem>>, vector<1x8x256xf32>
    %95 = vector.shape_cast %94 : vector<1x8x256xf32> to vector<8x256xf32>
    %cst_41 = arith.constant 1.000000e+01 : f32
    %96 = vector.broadcast %cst_41 : f32 to vector<8x256xf32>
    %97 = arith.mulf %95, %96 : vector<8x256xf32>
    %cst_42 = arith.constant dense<0xFF800000> : vector<8xf32>
    %98 = vector.multi_reduction <maximumf>, %97, %cst_42 [1] : vector<8x256xf32> to vector<8xf32>
    %99 = vector.shape_cast %98 : vector<8xf32> to vector<8x1xf32>
    %100 = vector.broadcast %99 : vector<8x1xf32> to vector<8x256xf32>
    %101 = arith.subf %97, %100 : vector<8x256xf32>
    %102 = math.exp %101 : vector<8x256xf32>
    %cst_43 = arith.constant dense<0.000000e+00> : vector<8xf32>
    %103 = vector.multi_reduction <add>, %102, %cst_43 [1] : vector<8x256xf32> to vector<8xf32>
    %104 = vector.shape_cast %103 : vector<8xf32> to vector<8x1xf32>
    %105 = math.log %104 : vector<8x1xf32>
    %106 = vector.broadcast %105 : vector<8x1xf32> to vector<8x256xf32>
    %107 = arith.subf %101, %106 : vector<8x256xf32>
    %108 = arith.addf %93, %107 : vector<8x256xf32>
    %109 = arith.mulf %59, %108 : vector<8x256xf32>
    %cst_44 = arith.constant dense<0.000000e+00> : vector<8xf32>
    %110 = vector.multi_reduction <add>, %109, %cst_44 [1] : vector<8x256xf32> to vector<8xf32>
    %111 = vector.shape_cast %110 : vector<8xf32> to vector<8x1xf32>
    %112 = arith.subf %78, %111 : vector<8x1xf32>
    %c0_45 = arith.constant 0 : index
    %c0_46 = arith.constant 0 : index
    %c0_47 = arith.constant 0 : index
    %113 = vector.load %arg5[%c0_45, %c0_46, %c0_47] : memref<1x1x1xf32, #tpu.memory_space<vmem>>, vector<1x1x1xf32>
    %cst_48 = arith.constant dense<0.000000e+00> : vector<1xf32>
    %114 = vector.multi_reduction <add>, %112, %cst_48 [0] : vector<8x1xf32> to vector<1xf32>
    %115 = vector.shape_cast %114 : vector<1xf32> to vector<1x1xf32>
    %116 = vector.shape_cast %115 : vector<1x1xf32> to vector<1x1x1xf32>
    %117 = arith.addf %113, %116 : vector<1x1x1xf32>
    %c0_49 = arith.constant 0 : index
    %c0_50 = arith.constant 0 : index
    %c0_51 = arith.constant 0 : index
    %118 = vector.load %arg5[%c0_49, %c0_50, %c0_51] : memref<1x1x1xf32, #tpu.memory_space<vmem>>, vector<1x1x1xf32>
    tpu.vector_store %arg5[%c0_49, %c0_50, %c0_51], %117 {strides = array<i32>} : memref<1x1x1xf32, #tpu.memory_space<vmem>>, vector<1x1x1xf32>,
    %c1_i32 = arith.constant 1 : i32
    %119 = arith.cmpi eq, %arg1, %c1_i32 : i32
    %120 = arith.extui %119 : i1 to i32
    %c0_i32_52 = arith.constant 0 : i32
    %121 = arith.cmpi ne, %120, %c0_i32_52 : i32
    scf.if %121 {
      %c0_53 = arith.constant 0 : index
      %c0_54 = arith.constant 0 : index
      %122 = vector.load %arg7[%c0_53, %c0_54] : memref<8x256xf32, #tpu.memory_space<vmem>>, vector<8x256xf32>
      %cst_55 = arith.constant dense<0.000000e+00> : vector<256xf32>
      %123 = vector.multi_reduction <add>, %122, %cst_55 [0] : vector<8x256xf32> to vector<256xf32>
      %124 = vector.shape_cast %123 : vector<256xf32> to vector<1x256xf32>
      %125 = vector.shape_cast %124 : vector<1x256xf32> to vector<1x1x256xf32>
      %c0_56 = arith.constant 0 : index
      %c0_57 = arith.constant 0 : index
      %c0_58 = arith.constant 0 : index
      %126 = vector.load %arg6[%c0_56, %c0_57, %c0_58] : memref<1x1x256xf32, #tpu.memory_space<vmem>>, vector<1x1x256xf32>
      tpu.vector_store %arg6[%c0_56, %c0_57, %c0_58], %125 {strides = array<i32>} : memref<1x1x256xf32, #tpu.memory_space<vmem>>, vector<1x1x256xf32>,
    } else {
    }
    return
  }
  func.func @transform_0(%arg0: i32, %arg1: i32) -> (i32, i32, i32) {
    %c2_i32 = arith.constant 2 : i32
    %0 = arith.muli %arg0, %c2_i32 : i32
    %1 = arith.addi %0, %arg1 : i32
    %c0_i32 = arith.constant 0 : i32
    %c0_i32_0 = arith.constant 0 : i32
    %c0_i32_1 = arith.constant 0 : i32
    return %c0_i32, %1, %c0_i32_0 : i32, i32, i32
  }
  func.func @transform_1(%arg0: i32, %arg1: i32) -> (i32, i32, i32) {
    %c2_i32 = arith.constant 2 : i32
    %0 = arith.muli %arg0, %c2_i32 : i32
    %1 = arith.addi %0, %arg1 : i32
    %c0_i32 = arith.constant 0 : i32
    %c0_i32_0 = arith.constant 0 : i32
    %c0_i32_1 = arith.constant 0 : i32
    return %c0_i32, %1, %c0_i32_0 : i32, i32, i32
  }
  func.func @transform_2(%arg0: i32, %arg1: i32) -> (i32, i32) {
    %c0_i32 = arith.constant 0 : i32
    %c0_i32_0 = arith.constant 0 : i32
    %c0_i32_1 = arith.constant 0 : i32
    return %c0_i32, %c0_i32_0 : i32, i32
  }
  func.func @transform_3(%arg0: i32, %arg1: i32) -> (i32, i32, i32) {
    %c0_i32 = arith.constant 0 : i32
    %c0_i32_0 = arith.constant 0 : i32
    %c0_i32_1 = arith.constant 0 : i32
    return %arg0, %c0_i32, %c0_i32_0 : i32, i32, i32
  }
  func.func @transform_4(%arg0: i32, %arg1: i32) -> (i32, i32, i32) {
    %c0_i32 = arith.constant 0 : i32
    %c0_i32_0 = arith.constant 0 : i32
    %c0_i32_1 = arith.constant 0 : i32
    return %arg0, %c0_i32, %c0_i32_0 : i32, i32, i32
  }
}

</mosaic_0001>

<bundles_post_ra>
// kernel: tpu_custom_call.1
= control target key start
LH: loop header
LB: loop body
LE: loop exit
PB: predicated region body
PF: predicated region fallthrough
CT: control target
= control target key end

     0   :  { %s1439_s0 = inlined_call_operand.hbm [shape: f32[4,32,256], index: 0, kind: input, shape index: {}]   ;;  %s1440_s1 = inlined_call_operand.hbm [shape: f32[2,32,256], index: 1, kind: input, shape index: {}]   ;;  %s1441_s2 = inlined_call_operand.vmem [shape: f32[1,256], index: 2, kind: input, shape index: {}]   ;;  %s1442_s3 = inlined_call_operand.vmem [shape: f32[2,1,1], index: 3, kind: output, shape index: {0}]   ;;  %s1443_s4 = inlined_call_operand.hbm [shape: f32[2,1,256], index: 4, kind: output, shape index: {1}]  }
   0x1   :  { %1452 = sst [smem:[#allocation19_spill]] %s1439_s0 }
   0x2   :  { %10 = vsyncpa [#allocation4], 0 }
   0x3   :  { %12 = vsyncpa [#allocation4 + $0x1], 0 }
   0x4   :  { %13 = vsyncpa [#allocation7], 0 }
   0x5   :  { %15 = vsyncpa [#allocation7 + $0x1], 0 }
   0x6   :  { %16 = vsyncpa [#allocation5], 0 }
   0x7   :  { %18 = vsyncpa [#allocation5 + $0x1], 0  ;;  %s1082_s15 = smov 0   ;;  %s1084_s16 = smov 0  }
   0x8   :  { %s1086_s17 = smov 0   ;;  %s1088_s18 = smov 0  }
   0x9   :  { %s1090_s19 = smov 0   ;;  %s1092_s20 = smov 0  }
   0xa   :  { %s1094_s21 = smov 0   ;;  %s1096_s22 = smov 0  }
   0xb   :  { %s1098_s23 = smov 0   ;;  %s1100_s24 = smov 0  }
   0xc   :  { %s1102_s25 = smov 0  }
   0xd LB: > { %1453 = sst [smem:[#allocation12_spill]] %s1027_s20  ;;  %s675_s26 = sadd.s32 4294967295, %s1047_s25   ;;  %s1047_s25 = sphi %s1102_s25, %s24_s25   ;;  %s1043_s24 = sphi %s1100_s24, %s1479_s24   ;;  %s1039_s23 = sphi %s1098_s23, %s1478_s23   ;;  %s1035_s22 = sphi %s1096_s22, %s1477_s22   ;;  %s1031_s21 = sphi %s1094_s21, %s1476_s21   ;;  %s1027_s20 = sphi %s1092_s20, %s1475_s20   ;;  %s1023_s19 = sphi %s1090_s19, %s1484_s19   ;;  %s1019_s18 = sphi %s1088_s18, %s1483_s18   ;;  %s1015_s17 = sphi %s1086_s17, %s1482_s17   ;;  %s1011_s16 = sphi %s1084_s16, %s1481_s16   ;;  %s1007_s15 = sphi %s1082_s15, %s1480_s15  }
   0xe   : > { %1454 = sst [smem:[#allocation13_spill]] %s1039_s23  ;;  %s676_s27 = sadd.s32 4294967294, %s1047_s25  }
   0xf   : > { %1455 = sst [smem:[#allocation14_spill]] %s1043_s24  ;;  %s33_s28 = sadd.s32 1, %s1039_s23 }
  0x10   : > { %s36_s29 = sadd.s32 1, %s1043_s24  ;;  %p34_p0 = scmp.ge.s32.totalorder %s33_s28, 2 }
  0x11   : > { %s677_s30 = sshll.u32 %s1043_s24, 1  ;;  %s47_s6 = sadd.s32 1, %s1027_s20 }
  0x12   : > { %s1141_s5 = sadd.s32 %s1039_s23, %s677_s30  ;;  %s1486_s28 = smov (%p34_p0, %s33_s28), 0 }
  0x13   : > { %1456 = sst [smem:[#allocation15_spill]] %s1486_s28  ;;  %s1488_s29 = smov (!%p34_p0, %s36_s29), %s1043_s24 }
  0x14   : > { %p54_p1 = scmp.ne.s32.totalorder %s1027_s20, %s1023_s19  ;;  %p55_p2 = scmp.eq.s32.totalorder %s1047_s25, 0 }
  0x15   : > { %p38_p3 = scmp.ge.s32.totalorder %s1488_s29, 2  ;;  %p60_p4 = scmp.ne.s32.totalorder %s1023_s19, %s1019_s18 }
  0x16   : > { %p1151_p5 = por %p55_p2, %p54_p1  ;;  %p61_p6 = scmp.eq.s32.totalorder %s675_s26, 0 }
  0x17   : > { %s1490_s29 = smov (%p38_p3, %s1488_s29), 0  ;;  %s150_s9 = sadd.s32 1, %s1015_s17 }
  0x18   : > { %1458 = sst [smem:[#allocation16_spill]] %s1490_s29  ;;  %p1157_p7 = por %p61_p6, %p60_p4 }
  0x19   : > { %s678_s10 = sshll.u32 %s1490_s29, 1  ;;  %s147_s11 = ssub.s32 %s1043_s24, %s1490_s29 }
  0x1a   : > { %s1459_s8 = scalar_select %p1157_p7, 1, 0 }
  0x1b   : > { %s43_s12 = sadd.s32 %s678_s10, %s1486_s28  ;;  %p148_p8 = scmp.eq.s32.totalorder %s147_s11, 0 }
  0x1c   : > { %s44_s13 = ssub.s32 %s1141_s5, %s43_s12  ;;  %p160_p9 = scmp.ne.s32.totalorder %s1015_s17, %s1011_s16 }
  0x1d   : > { %p45_p10 = scmp.eq.s32.totalorder %s44_s13, 0  ;;  %p161_p11 = scmp.eq.s32.totalorder %s675_s26, 3 }
  0x1e   : > { %s1170_s14 = scalar_select %p148_p8, %s1015_s17, %s150_s9  }
  0x1f   : > { %s1173_s18 = scalar_select %p45_p10, %s1027_s20, %s47_s6  }
  0x20   : > { %1460 = sst [smem:[#allocation17_spill]] %s1170_s14  ;;  %p1175_p12 = por %p161_p11, %p160_p9 }
  0x21   : > { %1461 = sst [smem:[#allocation18_spill]] %s1173_s18  ;;  %p166_p13 = scmp.ne.s32.totalorder %s1011_s16, %s1007_s15 }
  0x22   : > { %s1462_s30 = scalar_select %p1175_p12, 1, 0 }
  0x23   : > { %p167_p0 = scmp.eq.s32.totalorder %s676_s27, 3  ;;  %p730_p1 = scmp.lt.s32.totalorder %s1047_s25, 4 }
  0x24   : > { %s1185_s10 = sand.u32 1, %s1027_s20   ;;  %s1447_s9 = sshll.u32 %s1141_s5, 8 }
  0x25   : > { %p1187_p2 = por %p167_p0, %p166_p13  ;;  %s683_s26 = sshll.u32 %s1185_s10, 6 }
  0x26   : > { %s1464_s0 = sld [smem:[#allocation19_spill]]  ;;  %s194_s27 = scalar_lea.vmem [#allocation3], %s683_s26 }
  0x27   : > { %s1463_s11 = scalar_select %p1187_p2, 1, 0 }
  0x28   : > { %s203_s29 = sshll.u32 %s194_s27, 4  ;;  %p1202_p3 = pnand %p730_p1, %p1151_p5  ;;  %s1206_s29 = int_to_ptr.vmem [resolvable:$true] %s203_s29 }
  0x2a   : > { %p863_p8 = pneg %p1202_p3 }
  0x2c   : > { %s1198_s13 = scalar_lea.hbm %s1464_s0, %s1447_s9  ;;  %s866_s12 = scalar_lea.hbm %s1464_s0, 4096 }
  0x2d   : > { %s861_s6 = scalar_lea.hbm %s1198_s13, 1024  ;;  %p867_p5 = scmp.lt.u32.totalorder %s1198_s13, %s1464_s0 }
  0x2e   : > { %p862_p6 = scmp.ne.s32.totalorder %s1198_s13, %s861_s6  ;;  %p868_p11 = scmp.lt.u32.totalorder %s866_s12, %s861_s6 }
  0x2f   : > { %p870_p0 = scmp.lt.u32.totalorder %s861_s6, %s1198_s13 }
  0x30   : > { %p864_p9 = pnand %p863_p8, %p862_p6  ;;  %p869_p13 = por %p868_p11, %p867_p5 }
  0x32   : > { %p865_p10 = pneg %p864_p9  ;;  %p871_p1 = por %p870_p0, %p869_p13 }
  0x34   : > { %p872_p4 = pnand %p871_p1, %p865_p10 }
  0x36   : > { %875 = shalt.err (!%p872_p4)
}
  0x37   : > { %s876_s24 = scalar_lea.vmem %s1206_s29, 1024  ;;  %s1049_s26 = smov [#allocation3]  }
  0x38   : > { %p877_p6 = scmp.ne.s32.totalorder %s1206_s29, %s876_s24  ;;  %s881_s7 = sshll.u32 %s1049_s26, 4  ;;  %s882_s7 = int_to_ptr.vmem [resolvable:$false] %s881_s7 }
  0x39   : > { %s883_s9 = scalar_lea.vmem %s882_s7, 2048  ;;  %p884_p12 = scmp.lt.s32.totalorder %s1206_s29, %s882_s7 }
  0x3a   : > { %p879_p9 = pnand %p877_p6, %p863_p8  ;;  %p885_p5 = scmp.lt.s32.totalorder %s883_s9, %s876_s24 }
  0x3c   : > { %p880_p2 = pneg %p879_p9  ;;  %p886_p11 = por %p885_p5, %p884_p12 }
  0x3e   : > { %p887_p13 = pnand %p886_p11, %p880_p2 }
  0x40   : > { %890 = shalt.err (!%p887_p13)
}
  0x41   : > { %s1050_s6 = smov 1024   ;;  %s1051_s12 = smov 256  }
  0x42   : > { %s1052_s27 = smov 16   ;;  %s1466_s24 = scalar_lea.sflag [#allocation4], %s1185_s10 }
  0x43   : > { %722 = dma.hbm_to_vmem [thread:$0]  (!%p1202_p3), %s1198_s13, 1024, %s1206_s29, %s1466_s24, %s1050_s6, %s1051_s12, %s1052_s27  }
  0x44   : > { %p234_p12 = scmp.lt.s32.totalorder %s1047_s25, 5  ;;  %s687_s26 = sshll.u32 %s1185_s10, 5 }
  0x45   : > { %s1467_s7 = sshll.u32 %s1141_s5, 8  ;;  %p1468_p2 = scmp.ge.s32.totalorder %s1047_s25, 1 }
  0x46   : > { %s1247_s23 = scalar_lea.hbm %s1440_s1, %s1467_s7  ;;  %s217_s20 = scalar_lea.vmem [#allocation6], %s687_s26 }
  0x47   : > { %p1251_p4 = pnand %p1468_p2, %p234_p12  ;;  %s226_s14 = sshll.u32 %s217_s20, 4  ;;  %s1255_s14 = int_to_ptr.vmem [resolvable:$true] %s226_s14 }
  0x48   : > { %s214_s29 = scalar_lea.sflag [#allocation7], %s1185_s10  ;;  %s891_s5 = scalar_lea.hbm %s1247_s23, 512 }
  0x49   : > { %p892_p10 = scmp.ne.s32.totalorder %s1247_s23, %s891_s5  ;;  %s896_s24 = scalar_lea.hbm %s1440_s1, 2048 }
  0x4a   : > { %p897_p6 = scmp.lt.u32.totalorder %s1247_s23, %s1440_s1  ;;  %p898_p9 = scmp.lt.u32.totalorder %s896_s24, %s891_s5 }
  0x4b   : > { %p894_p0 = pnand %p892_p10, %p863_p8  ;;  %p900_p11 = scmp.lt.u32.totalorder %s891_s5, %s1247_s23 }
  0x4c   : > { %p899_p5 = por %p898_p9, %p897_p6 }
  0x4d   : > { %p895_p1 = pneg %p894_p0 }
  0x4e   : > { %p901_p13 = por %p900_p11, %p899_p5 }
  0x50   : > { %p902_p12 = pnand %p901_p13, %p895_p1 }
  0x52   : > { %905 = shalt.err (!%p902_p12)
}
  0x53   : > { %s906_s20 = scalar_lea.vmem %s1255_s14, 512  ;;  %s1053_s26 = smov [#allocation6]  }
  0x54   : > { %p907_p2 = scmp.ne.s32.totalorder %s1255_s14, %s906_s20  ;;  %s911_s0 = sshll.u32 %s1053_s26, 4  ;;  %s912_s0 = int_to_ptr.vmem [resolvable:$false] %s911_s0 }
  0x55   : > { %s913_s13 = scalar_lea.vmem %s912_s0, 1024  ;;  %p914_p7 = scmp.lt.s32.totalorder %s1255_s14, %s912_s0 }
  0x56   : > { %p909_p10 = pnand %p907_p2, %p863_p8  ;;  %p915_p6 = scmp.lt.s32.totalorder %s913_s13, %s906_s20 }
  0x58   : > { %p910_p0 = pneg %p909_p10  ;;  %p916_p9 = por %p915_p6, %p914_p7 }
  0x5a   : > { %p917_p5 = pnand %p916_p9, %p910_p0 }
  0x5c   : > { %920 = shalt.err (!%p917_p5)
}
  0x5d   : > { %725 = dma.hbm_to_vmem [thread:$0]  (!%p1202_p3), %s1247_s23, 512, %s1255_s14, %s214_s29, %s1050_s6, %s1051_s12, %s1052_s27  }
  0x5e   : > { %238 = sbr.rel (%p1251_p4) target bundleno = 638 (0x27e), region = 32  ;;  %s240_s5 = sand.u32 (!%p1251_p4), 1, %s1023_s19  }
  0x5f   : > { %s692_s24 = sshll.u32 (!%p1251_p4), %s240_s5, 6  ;;  %s241_s7 = scalar_lea.sflag (!%p1251_p4), [#allocation4], %s240_s5 }
  0x60   : > { %s1289_s9 = scalar_lea.vmem (!%p1251_p4), [#allocation3], %s692_s24  ;;  %p1470_p7 = scmp.ne.s32.totalorder (!%p1251_p4), %s1459_s8, 0 }
  0x65   : > { %994 = dma.done.wait (%p1470_p7), %s241_s7, 1024  }
  0x66   : > { %996 = vsyncadd (%p1470_p7), %s241_s7, 4294966272  ;;  %s693_s28 = sshll.u32 %s240_s5, 5  ;;  %s250_s10 = scalar_lea.sflag [#allocation7], %s240_s5 }
  0x67   : > { %s1295_s20 = scalar_lea.vmem [#allocation6], %s693_s28 }
  0x68   : > { %998 = dma.done.wait (%p1470_p7), %s250_s10, 512  }
  0x69   : > { %1000 = vsyncadd (%p1470_p7), %s250_s10, 4294966784  ;;  %s283_s23 = sand.u32 1, %s1011_s16   ;;  %p290_p3 = scmp.lt.s32.totalorder %s1035_s22, 1 }
  0x6a   : > { %s1305_s14 = sshll.u32 %s283_s23, 1  ;;  %p695_p8 = scmp.ne.s32.totalorder %s1031_s21, 0 }
  0x6b   : > { %s291_s18 = scalar_select %p290_p3, %s1035_s22, 1 }
  0x6c   : > { %s285_s29 = scalar_lea.vmem [#allocation8], %s1305_s14  ;;  %296 = sbr.rel (%p695_p8) target bundleno = 115 (0x73), region = 44  ;;  %vm297_vm0 = vcmask (!%p695_p8), 0   ;;  %v1054_v0 = vmov (!%p695_p8), 0.0  }
  0x6d   : > { %s1311_s27 = scalar_lea.vmem %s1442_s3, %s291_s18  ;;  %299 = vst [vmem:[#allocation2] sm:$0xff] (!%p695_p8), %v1054_v0  ;;  %300 = vst [vmem:[#allocation2 + $0x8] sm:$0xff] (!%p695_p8), %v1054_v0 }
  0x6e   : > { %298 = vst.msk [vmem:[%s1311_s27] sm:$0x1] (!%p695_p8), %vm297_vm0, %v1054_v0 }
  0x73 PF: > { %v340_v1 = vld [vmem:[%s1289_s9] sm:$0xff]  ;;  %v341_v2 = vld [vmem:[%s1289_s9 + $0x8] sm:$0xff]  ;;  %v311_v4 = vlaneseq  ;;  %v698_v9 = vld [vmem:[%s1289_s9 + $0x10] sm:$0xff]  ;;  %vm484_vm1 = vcmask 0   ;;  %p704_p4 = scmp.ne.s32.totalorder %s1031_s21, 1 }
  0x74   : > { %v700_v3 = vld [vmem:[%s1289_s9 + $0x20] sm:$0xff]  ;;  %v342_v5 = vmul.f32 10.0, %v340_v1  ;;  %v343_v6 = vmul.f32 10.0, %v341_v2  ;;  %v701_v7 = vld [vmem:[%s1289_s9 + $0x28] sm:$0xff]  ;;  %v699_v10 = vld [vmem:[%s1289_s9 + $0x18] sm:$0xff]  ;;  %v398_v12 = vmul.f32 10.0, %v698_v9 }
  0x75   : > { %v427_v8 = vmul.f32 10.0, %v700_v3  ;;  %v428_v11 = vmul.f32 10.0, %v701_v7  ;;  %v399_v13 = vmul.f32 10.0, %v699_v10  ;;  %v702_v14 = vld [vmem:[%s1289_s9 + $0x30] sm:$0xff]  ;;  %v703_v15 = vld [vmem:[%s1289_s9 + $0x38] sm:$0xff]  ;;  %v302_v19 = vld [vmem:[%s1295_s20] sm:$0xff] }
  0x76   : > { %v344_v16 = vmax.f32 %v342_v5, %v343_v6  ;;  %v450_v17 = vmul.f32 10.0, %v702_v14  ;;  %v451_v18 = vmul.f32 10.0, %v703_v15  ;;  %v304_v20 = vld [vmem:[#allocation2] sm:$0xff]  ;;  %v303_v22 = vld [vmem:[%s1295_s20 + $0x8] sm:$0xff]  ;;  %v305_v23 = vld [vmem:[#allocation2 + $0x8] sm:$0xff]  ;;  %v1327_v25 = vshrl.u32 %v311_v4, 7 }
  0x77   : > { %v429_v21 = vmax.f32 %v427_v8, %v428_v11  ;;  %v306_v24 = vadd.f32 %v304_v20, %v302_v19  ;;  %v400_v26 = vmax.f32 %v398_v12, %v399_v13  ;;  %v301_v27 = vld [vmem:[%s1441_s2] sm:$0x3]  ;;  %v307_v28 = vadd.f32 %v305_v23, %v303_v22  ;;  %v697_v33 = vld [vmem:[%s1295_s20 + $0x18] sm:$0xff] }
  0x78   : > { %345 = vmax.xlane.f32.xlu0 %v344_v16  ;;  %v696_v29 = vld [vmem:[%s1295_s20 + $0x10] sm:$0xff]  ;;  %v452_v30 = vmax.f32 %v450_v17, %v451_v18  ;;  %v313_v31 = vsub.s32 0, %v1327_v25  ;;  %v317_v32 = vsub.s32 1, %v1327_v25  ;;  %vm524_vm2 = vcmp.lt.s32.totalorder (!%p704_p4), %v311_v4, 256 }
  0x79   : > { %430 = vmax.xlane.f32.xlu1 %v429_v21  ;;  %v370_v34 = vadd.f32 %v696_v29, %v306_v24  ;;  %v371_v35 = vadd.f32 %v697_v33, %v307_v28 }
  0x7a   : > { %v314_v36 = vrot.slane %v301_v27, %v313_v31  ;;  %v318_v37 = vrot.slane %v301_v27, %v317_v32 }
  0x7b   : > { %372 = vst [vmem:[#allocation2] sm:$0xff] %v370_v34  ;;  %373 = vst [vmem:[#allocation2 + $0x8] sm:$0xff] %v371_v35 }
  0x7c   : > { %401 = vmax.xlane.f32.xlu0 %v400_v26  ;;  %v321_v38 = vsub.f32 %v302_v19, %v314_v36  ;;  %v322_v39 = vsub.f32 %v303_v22, %v318_v37  ;;  %v374_v40 = vsub.f32 %v696_v29, %v314_v36  ;;  %v375_v41 = vsub.f32 %v697_v33, %v318_v37 }
  0x7d   : > { %453 = vmax.xlane.f32.xlu1 %v452_v30 }
  0x7e   : > { %v323_v42 = vmul.f32 25.0, %v321_v38  ;;  %v324_v43 = vmul.f32 25.0, %v322_v39  ;;  %v376_v44 = vmul.f32 25.0, %v374_v40  ;;  %v377_v45 = vmul.f32 25.0, %v375_v41 }
  0x80   : > { %v325_v46 = vmax.f32 %v323_v42, %v324_v43  ;;  %v378_v47 = vmax.f32 %v376_v44, %v377_v45 }
  0x82   : > { %326 = vmax.xlane.f32.xlu0 %v325_v46  ;;  %379 = vmax.xlane.f32.xlu1 %v378_v47 }
 0x105   : > { %v346_v48 = vpop.xlane.xlu0 %345 }
 0x106   : > { %v1336_v49 = vsub.f32 %v342_v5, %v346_v48  ;;  %v1338_v50 = vsub.f32 %v343_v6, %v346_v48  ;;  %v431_v51 = vpop.xlane.xlu1 %430 }
 0x107   : > { %v1340_v52 = vsub.f32 %v427_v8, %v431_v51  ;;  %v1342_v53 = vsub.f32 %v428_v11, %v431_v51 }
 0x108   : > { %v349_v54 = vmul.f32 1.442695, %v1336_v49  ;;  %v351_v55 = vmul.f32 1.442695, %v1338_v50 }
 0x109   : > { %v434_v56 = vmul.f32 1.442695, %v1340_v52  ;;  %v436_v57 = vmul.f32 1.442695, %v1342_v53  ;;  %v402_v58 = vpop.xlane.xlu0 %401 }
 0x10a   : > { %825 = vpow2.f32 %v349_v54  ;;  %v1348_v59 = vsub.f32 %v398_v12, %v402_v58  ;;  %v1350_v60 = vsub.f32 %v399_v13, %v402_v58  ;;  %v454_v61 = vpop.xlane.xlu1 %453 }
 0x10b   : > { %827 = vpow2.f32 %v351_v55  ;;  %v1352_v62 = vsub.f32 %v450_v17, %v454_v61  ;;  %v1354_v63 = vsub.f32 %v451_v18, %v454_v61 }
 0x10c   : > { %829 = vpow2.f32 %v434_v56  ;;  %v405_v0 = vmul.f32 1.442695, %v1348_v59  ;;  %v407_v1 = vmul.f32 1.442695, %v1350_v60 }
 0x10d   : > { %831 = vpow2.f32 %v436_v57  ;;  %v457_v2 = vmul.f32 1.442695, %v1352_v62  ;;  %v459_v3 = vmul.f32 1.442695, %v1354_v63 }
 0x10e   : > { %833 = vpow2.f32 %v405_v0 }
 0x10f   : > { %835 = vpow2.f32 %v407_v1  ;;  %v327_v5 = vpop.xlane.xlu0 %326  ;;  %v380_v6 = vpop.xlane.xlu1 %379 }
 0x110   : > { %837 = vpow2.f32 %v457_v2  ;;  %v328_v7 = vsub.f32 %v323_v42, %v327_v5  ;;  %v329_v8 = vsub.f32 %v324_v43, %v327_v5  ;;  %v381_v9 = vsub.f32 %v376_v44, %v380_v6 }
 0x111   : > { %839 = vpow2.f32 %v459_v3  ;;  %v382_v10 = vsub.f32 %v377_v45, %v380_v6 }
 0x112   : > { %v330_v11 = vmul.f32 1.442695, %v328_v7  ;;  %v332_v12 = vmul.f32 1.442695, %v329_v8  ;;  %v383_v13 = vmul.f32 1.442695, %v381_v9 }
 0x113   : > { %v385_v15 = vmul.f32 1.442695, %v382_v10 }
 0x114   : > { %v826_v14 = vpop.eup %825  ;;  %841 = vpow2.f32 %v330_v11 }
 0x115   : > { %v828_v16 = vpop.eup %827  ;;  %843 = vpow2.f32 %v332_v12 }
 0x116   : > { %v830_v17 = vpop.eup %829  ;;  %v353_v18 = vadd.f32 %v828_v16, %v826_v14  ;;  %845 = vpow2.f32 %v383_v13 }
 0x117   : > { %v832_v19 = vpop.eup %831  ;;  %847 = vpow2.f32 %v385_v15 }
 0x118   : > { %v834_v20 = vpop.eup %833  ;;  %354 = vadd.xlane.f32.xlu0 %v353_v18  ;;  %v438_v21 = vadd.f32 %v832_v19, %v830_v17 }
 0x119   : > { %v836_v22 = vpop.eup %835 }
 0x11a   : > { %v838_v23 = vpop.eup %837  ;;  %v409_v24 = vadd.f32 %v836_v22, %v834_v20 }
 0x11b   : > { %v840_v26 = vpop.eup %839 }
 0x11c   : > { %410 = vadd.xlane.f32.xlu1 %v409_v24  ;;  %439 = vadd.xlane.f32.xlu0 %v438_v21  ;;  %v461_v27 = vadd.f32 %v840_v26, %v838_v23 }
 0x11e   : > { %v842_v28 = vpop.eup %841 }
 0x11f   : > { %v844_v29 = vpop.eup %843 }
 0x120   : > { %462 = vadd.xlane.f32.xlu1 %v461_v27  ;;  %v846_v30 = vpop.eup %845  ;;  %v334_v31 = vadd.f32 %v844_v29, %v842_v28  ;;  %v476_v27 = vld [vmem:[%s1311_s27] sm:$0x1] }
 0x121   : > { %v848_v32 = vpop.eup %847 }
 0x122   : > { %335 = vadd.xlane.f32.xlu0 %v334_v31  ;;  %v387_v33 = vadd.f32 %v848_v32, %v846_v30  ;;  %v491_v31 = vld [vmem:[#allocation2 + $0x8] sm:$0xff] (!%p704_p4) }
 0x124   : > { %388 = vadd.xlane.f32.xlu1 %v387_v33  ;;  %v498_v33 = vrot.slane (!%p704_p4), %v491_v31, 4 }
 0x1a5   : > { %v355_v34 = vpop.xlane.xlu0 %354 }
 0x1a6   : > { %849 = vlog2.f32 %v355_v34 }
 0x1a9   : > { %v411_v35 = vpop.xlane.xlu1 %410  ;;  %v440_v36 = vpop.xlane.xlu0 %439 }
 0x1aa   : > { %851 = vlog2.f32 %v411_v35  ;;  %v499_v35 = vadd.f32 (!%p704_p4), %v498_v33, %v491_v31 }
 0x1ab   : > { %853 = vlog2.f32 %v440_v36  ;;  %v1055_v36 = vmov (!%p704_p4), 1966171168  }
 0x1ad   : > { %v463_v37 = vpop.xlane.xlu1 %462 }
 0x1ae   : > { %855 = vlog2.f32 %v463_v37  ;;  %v508_v37 = vunpack.c.l.s4 (!%p704_p4), %v1055_v36 }
 0x1af   : > { %v336_v39 = vpop.xlane.xlu0 %335 }
 0x1b0   : > { %v850_v38 = vpop.eup %849  ;;  %857 = vrcp.f32 %v336_v39  ;;  %v500_v39 = vrot.slane (!%p704_p4), %v499_v35, 2 }
 0x1b1   : > { %v389_v40 = vpop.xlane.xlu1 %388  ;;  %v357_v41 = vmul.f32 0.6931472, %v850_v38 }
 0x1b2   : > { %859 = vrcp.f32 %v389_v40 }
 0x1b3   : > { %v358_v46 = vsub.f32 %v1336_v49, %v357_v41  ;;  %v359_v47 = vsub.f32 %v1338_v50, %v357_v41  ;;  %v501_v41 = vadd.f32 (!%p704_p4), %v500_v39, %v499_v35 }
 0x1b4   : > { %v852_v42 = vpop.eup %851 }
 0x1b5   : > { %v854_v43 = vpop.eup %853  ;;  %v413_v44 = vmul.f32 0.6931472, %v852_v42  ;;  %v509_v42 = vunpack.c.0.s8 (!%p704_p4), %v508_v37 }
 0x1b6   : > { %v442_v45 = vmul.f32 0.6931472, %v854_v43 }
 0x1b7   : > { %v414_v48 = vsub.f32 %v1348_v59, %v413_v44  ;;  %v415_v51 = vsub.f32 %v1350_v60, %v413_v44  ;;  %v502_v44 = vrot.slane (!%p704_p4), %v501_v41, 1 }
 0x1b8   : > { %v856_v54 = vpop.eup %855  ;;  %v443_v57 = vsub.f32 %v1340_v52, %v442_v45  ;;  %v444_v0 = vsub.f32 %v1342_v53, %v442_v45 }
 0x1b9   : > { %v416_v55 = vadd.f32 %v414_v48, %v358_v46  ;;  %v417_v56 = vadd.f32 %v415_v51, %v359_v47  ;;  %v465_v58 = vmul.f32 0.6931472, %v856_v54 }
 0x1ba   : > { %v858_v61 = vpop.eup %857 }
 0x1bb   : > { %v445_v1 = vadd.f32 %v443_v57, %v416_v55  ;;  %v466_v2 = vsub.f32 %v1352_v62, %v465_v58  ;;  %v338_v3 = vmul.f32 %v858_v61, %v842_v28  ;;  %v339_v49 = vmul.f32 %v858_v61, %v844_v29 }
 0x1bc   : > { %v860_v5 = vpop.eup %859  ;;  %v446_v50 = vadd.f32 %v444_v0, %v417_v56  ;;  %v467_v59 = vsub.f32 %v1354_v63, %v465_v58 }
 0x1bd   : > { %v360_v6 = vmul.f32 %v358_v46, %v338_v3  ;;  %v361_v60 = vmul.f32 %v359_v47, %v339_v49  ;;  %v391_v7 = vmul.f32 %v860_v5, %v846_v30  ;;  %v392_v8 = vmul.f32 %v860_v5, %v848_v32  ;;  %v490_v30 = vld [vmem:[#allocation2] sm:$0xff] (!%p704_p4) }
 0x1be   : > { %v468_v9 = vadd.f32 %v466_v2, %v445_v1  ;;  %v469_v53 = vadd.f32 %v467_v59, %v446_v50  ;;  %v492_v32 = vrot.slane (!%p704_p4), %v490_v30, 4  ;;  %v503_v46 = vadd.f32 (!%p704_p4), %v502_v44, %v501_v41 }
 0x1bf   : > { %v362_v10 = vadd.f32 %v361_v60, %v360_v6  ;;  %v418_v52 = vmul.f32 %v414_v48, %v391_v7  ;;  %v419_v11 = vmul.f32 %v415_v51, %v392_v8  ;;  %v393_v12 = vadd.f32 %v391_v7, %v338_v3 }
 0x1c0   : > { %v394_v13 = vadd.f32 %v392_v8, %v339_v49  ;;  %v493_v34 = vadd.f32 (!%p704_p4), %v492_v32, %v490_v30  ;;  %v512_v47 = vsub.s32 (!%p704_p4), %v509_v42, %v1327_v25 }
 0x1c1   : > { %363 = vadd.xlane.f32.xlu0 %v362_v10  ;;  %v420_v14 = vadd.f32 %v419_v11, %v418_v52  ;;  %v470_v62 = vmul.f32 %v468_v9, %v393_v12 }
 0x1c2   : > { %v471_v15 = vmul.f32 %v469_v53, %v394_v13  ;;  %v494_v38 = vrot.slane (!%p704_p4), %v493_v34, 2 }
 0x1c3   : > { %421 = vadd.xlane.f32.xlu1 %v420_v14 }
 0x1c4   : > { %v472_v16 = vadd.f32 %v471_v15, %v470_v62  ;;  %v495_v40 = vadd.f32 (!%p704_p4), %v494_v38, %v493_v34 }
 0x1c6   : > { %473 = vadd.xlane.f32.xlu0 %v472_v16  ;;  %v496_v43 = vrot.slane (!%p704_p4), %v495_v40, 1 }
 0x1c8   : > { %v497_v45 = vadd.f32 (!%p704_p4), %v496_v43, %v495_v40 }
 0x1ca   : > { %v506_v48 = vcombine.low (!%p704_p4), %v497_v45, %v503_v46 }
 0x1cc   : > { %v513_v51 = vrot.slane (!%p704_p4), %v506_v48, %v512_v47 }
 0x1ce   : > { %v520_v54 = vrot.slane (!%p704_p4), %v513_v51, %v512_v47 }
 0x1d0   : > { %526 = vst.msk [vmem:[%s285_s29] sm:$0x3] (!%p704_p4), %vm524_vm2, %v520_v54 }
 0x24e   : > { %v364_v63 = vpop.xlane.xlu0 %363 }
 0x250   : > { %v422_v17 = vpop.xlane.xlu1 %421 }
 0x251   : > { %v423_v18 = vadd.f32 %v422_v17, %v364_v63 }
 0x253   : > { %v474_v19 = vpop.xlane.xlu0 %473 }
 0x254   : > { %v475_v20 = vsub.f32 %v423_v18, %v474_v19 }
 0x256   : > { %v477_v21 = vrot.slane %v475_v20, 4 }
 0x258   : > { %v478_v22 = vadd.f32 %v477_v21, %v475_v20 }
 0x25a   : > { %v479_v23 = vrot.slane %v478_v22, 2 }
 0x25c   : > { %v480_v24 = vadd.f32 %v479_v23, %v478_v22 }
 0x25e   : > { %v481_v26 = vrot.slane %v480_v24, 1  ;;  %489 = sbr.rel (%p704_p4) target bundleno = 613 (0x265), region = 48 }
 0x260   : > { %v482_v28 = vadd.f32 %v481_v26, %v480_v24 }
 0x262   : > { %v483_v29 = vadd.f32 %v482_v28, %v476_v27 }
 0x264   : > { %485 = vst.msk [vmem:[%s1311_s27] sm:$0x1] %vm484_vm1, %v483_v29 }
 0x265 PF: > { %s712_s21 = sshll.u32 %s1035_s22, 5  ;;  %s548_s24 = sshll.u32 %s285_s29, 4  ;;  %s549_s24 = int_to_ptr.vmem [resolvable:$true] %s548_s24 }
 0x266   : > { %s1379_s5 = scalar_lea.hbm %s1443_s4, %s712_s21  ;;  %s531_s7 = scalar_lea.sflag [#allocation5], %s283_s23 }
 0x267   : > { %s921_s9 = scalar_lea.vmem %s549_s24, 32  ;;  %p1471_p11 = scmp.ne.s32.totalorder %s1462_s30, 0 }
 0x268   : > { %p922_p1 = scmp.ne.s32.totalorder %s549_s24, %s921_s9  ;;  %s1056_s28 = smov [#allocation8]  }
 0x269   : > { %s925_s10 = sshll.u32 %s1056_s28, 4  ;;  %s926_s10 = int_to_ptr.vmem [resolvable:$false] %s925_s10 }
 0x26a   : > { %p923_p13 = pnand %p922_p1, %p1471_p11  ;;  %s927_s20 = scalar_lea.vmem %s926_s10, 64 }
 0x26b   : > { %p928_p2 = scmp.lt.s32.totalorder %s549_s24, %s926_s10  ;;  %p929_p10 = scmp.lt.s32.totalorder %s927_s20, %s921_s9 }
 0x26c   : > { %p924_p12 = pneg %p923_p13 }
 0x26d   : > { %p930_p0 = por %p929_p10, %p928_p2 }
 0x26f   : > { %p931_p6 = pnand %p930_p0, %p924_p12 }
 0x271   : > { %934 = shalt.err (!%p931_p6)
}
 0x272   : > { %s935_s22 = scalar_lea.hbm %s1379_s5, 32  ;;  %s939_s18 = scalar_lea.hbm %s1443_s4, 64 }
 0x273   : > { %p936_p9 = scmp.ne.s32.totalorder %s1379_s5, %s935_s22  ;;  %p940_p3 = scmp.lt.u32.totalorder %s1379_s5, %s1443_s4 }
 0x274   : > { %p941_p8 = scmp.lt.u32.totalorder %s939_s18, %s935_s22  ;;  %p943_p1 = scmp.lt.u32.totalorder %s935_s22, %s1379_s5 }
 0x275   : > { %p937_p5 = pnand %p936_p9, %p1471_p11 }
 0x276   : > { %p942_p4 = por %p941_p8, %p940_p3 }
 0x277   : > { %p938_p7 = pneg %p937_p5 }
 0x278   : > { %p944_p13 = por %p943_p1, %p942_p4 }
 0x27a   : > { %p945_p12 = pnand %p944_p13, %p938_p7 }
 0x27c   : > { %948 = shalt.err (!%p945_p12)
}
 0x27d   : > { %717 = dma.vmem_to_hbm [thread:$0]  (%p1471_p11), %s549_s24, 32, %s1379_s5, %s531_s7  }
 0x27e PF: > { %p731_p2 = scmp.ge.s32.totalorder %s1047_s25, 2  ;;  %s566_s27 = sand.u32 1, %s1007_s15  }
 0x27f   : > { %p1472_p10 = scmp.ne.s32.totalorder %s1463_s11, 0  ;;  %s567_s29 = scalar_lea.sflag [#allocation5], %s566_s27 }
 0x281   : > { %p727_p0 = pnand %p731_p2, %p1472_p10 }
 0x283   : > { %1002 = dma.done.wait (!%p727_p0), %s567_s29, 32  }
 0x284   : > { %1004 = vsyncadd (!%p727_p0), %s567_s29, 4294967264  ;;  %s24_s25 = sadd.s32 1, %s1047_s25   ;;  %s1473_s8 = sld [smem:[#allocation17_spill]] }
 0x285   : > { %p21_p6 = scmp.ge.s32.totalorder %s24_s25, 6   ;;  %s1474_s30 = sld [smem:[#allocation12_spill]] }
 0x286   : > { %s1475_s20 = sld [smem:[#allocation18_spill]]  ;;  %s1476_s21 = sld [smem:[#allocation13_spill]] }
 0x287   : > { %s1477_s22 = sld [smem:[#allocation14_spill]]  ;;  %s1478_s23 = sld [smem:[#allocation15_spill]] }
 0x288   : > { %s1479_s24 = sld [smem:[#allocation16_spill]]  ;;  %s1480_s15 = smov %s1011_s16 }
 0x289   : > { %s1481_s16 = smov %s1015_s17  ;;  %s1483_s18 = smov %s1023_s19 }
 0x28a   : > { %s1482_s17 = smov %s1473_s8  ;;  %23 = sbr.rel (!%p21_p6) target bundleno = 13 (0xd), region = 114 }
 0x28b   : > { %s1484_s19 = smov %s1474_s30 }
 0x291   :  { %572 = vsyncpa [#allocation4], 1 }
 0x292   :  { %574 = vsyncpa [#allocation4 + $0x1], 1 }
 0x293   :  { %575 = vsyncpa [#allocation7], 1 }
 0x294   :  { %577 = vsyncpa [#allocation7 + $0x1], 1 }
 0x295   :  { %578 = vsyncpa [#allocation5], 1 }
 0x296   :  { %580 = vsyncpa [#allocation5 + $0x1], 1 }

</bundles_post_ra>
